<compile_context>
chip_gen: v6e
topology: v6e:2x2x1
jax: 0.10.0
libtpu: 0.0.40
codegen_flags: <defaults>
</compile_context>

<pallas_src>
import jax
import jax.numpy as jnp
from jax.experimental import pallas as pl
from jax.experimental.pallas import tpu as pltpu


# ----------------------------- Pallas kernel ------------------------------- #
def fused_double_convblock_kernel(x_ref, t1_ref, b1_ref, t2_ref, b2_ref, o_ref,
                                  xpad_ref, mpad_ref):
    """Fused [conv3x3('same', no bias) + BN(folded) + ReLU] x 2 for one batch element.

    x_ref   : (1, H, W*Cin)          f32 input rows (channels flattened into lanes)
    t1_ref  : (3, W*Cin,  W*Cmid)    bf16 banded-Toeplitz conv1 weights (BN1 scale folded)
    b1_ref  : (1, W*Cmid)            f32 folded BN1 bias, tiled per output column
    t2_ref  : (3, W*Cmid, W*Cout)    bf16 banded-Toeplitz conv2 weights (BN2 scale folded)
    b2_ref  : (1, W*Cout)            f32 folded BN2 bias, tiled per output column
    o_ref   : (1, H, W*Cout)         f32 output rows (lane-dense store)
    xpad_ref: (H+2, W*Cin)   f32     VMEM scratch: input rows with 2 zero halo rows
    mpad_ref: (H+2, W*Cmid)  f32     VMEM scratch: conv1 activation rows + halo (VMEM only)
    """
    _, H, WCin = x_ref.shape
    WCmid = t1_ref.shape[2]
    WCout = t2_ref.shape[2]

    def conv3x3_bias_relu(pad_ref, t_ref, b_ref):
        # Banded block-Toeplitz conv: one MXU dot per kernel row (dy = 0,1,2).
        # Horizontal 'same' padding lives as structural zeros inside t_ref;
        # vertical 'same' padding is the two zero halo rows of pad_ref.
        acc = jnp.dot(pad_ref[0:H, :].astype(jnp.bfloat16), t_ref[0],
                      preferred_element_type=jnp.float32)
        acc = acc + jnp.dot(pad_ref[1:H + 1, :].astype(jnp.bfloat16), t_ref[1],
                            preferred_element_type=jnp.float32)
        acc = acc + jnp.dot(pad_ref[2:H + 2, :].astype(jnp.bfloat16), t_ref[2],
                            preferred_element_type=jnp.float32)
        return jnp.maximum(acc + b_ref[...], 0.0)          # f32 bias + ReLU

    # Zero only the vertical halo rows (rows 0 and H+1), every step: two tiny row
    # stores per buffer instead of a full-buffer fill.  (Not gated on program_id==0:
    # with a "parallel" batch axis each TensorCore owns its own scratch, so a
    # once-only init on grid step 0 would leave the other core's halo undefined.)
    xpad_ref[0:1, :] = jnp.zeros((1, WCin), xpad_ref.dtype)
    xpad_ref[H + 1:H + 2, :] = jnp.zeros((1, WCin), xpad_ref.dtype)
    mpad_ref[0:1, :] = jnp.zeros((1, WCmid), mpad_ref.dtype)
    mpad_ref[H + 1:H + 2, :] = jnp.zeros((1, WCmid), mpad_ref.dtype)

    # ---- conv block 1: input rows -> padded scratch interior (rows 1..H) ----
    # TODO(synk): at production shapes DMA the HBM input directly into this interior
    #             (memory_space=pl.ANY + make_async_copy) instead of the VMEM copy.
    xpad_ref[1:H + 1, :] = x_ref[0]
    h1 = conv3x3_bias_relu(xpad_ref, t1_ref, b1_ref)        # (H, W*Cmid) f32

    # ---- conv block 2: intermediate activation stays in VMEM (never hits HBM) ----
    mpad_ref[1:H + 1, :] = h1
    y = conv3x3_bias_relu(mpad_ref, t2_ref, b2_ref)         # (H, W*Cout) f32

    o_ref[...] = y.reshape(1, H, WCout).astype(o_ref.dtype)  # lane-dense (128-wide) store


# ------------------------------- wrapper ------------------------------------ #
def unet_double_conv_fused(x2d, t1, b1t, t2, b2t):
    """Fused UNETConvBlock forward on row-flattened NHWC (single pallas_call, grid over N)."""
    N, H, WCin = x2d.shape
    _, _, WCmid = t1.shape
    _, _, WCout = t2.shape

    return pl.pallas_call(
        fused_double_convblock_kernel,
        out_shape=jax.ShapeDtypeStruct((N, H, WCout), x2d.dtype),
        grid_spec=pltpu.PrefetchScalarGridSpec(
            num_scalar_prefetch=0,
            grid=(N,),                                    # one batch element per grid step
            in_specs=[
                pl.BlockSpec((1, H, WCin), lambda n: (n, 0, 0)),
                pl.BlockSpec((3, WCin, WCmid), lambda n: (0, 0, 0)),
                pl.BlockSpec((1, WCmid), lambda n: (0, 0)),
                pl.BlockSpec((3, WCmid, WCout), lambda n: (0, 0, 0)),
                pl.BlockSpec((1, WCout), lambda n: (0, 0)),
            ],
            out_specs=pl.BlockSpec((1, H, WCout), lambda n: (n, 0, 0)),
            scratch_shapes=[
                pltpu.VMEM((H + 2, WCin), jnp.float32),   # padded input rows
                pltpu.VMEM((H + 2, WCmid), jnp.float32),  # padded conv1 activation rows
            ],
        ),
        compiler_params=pltpu.CompilerParams(
            # batch axis is embarrassingly parallel -> shards across both TCs on v7x
            dimension_semantics=("parallel",),
        ),
    )(x2d, t1, b1t, t2, b2t)


def prepare_convblock_params(w_oihw, gamma, beta, mean, var, W, eps=1e-5):
    """Fold eval-mode BN into the conv and build the banded block-Toeplitz weights.

    Returns (T, bias_tiled):
      T[dy][(u*Cin + i), (x*Cout + o)] = scale[o] * w[o, i, dy, u-x+1]  if 0 <= u-x+1 <= 2
                                         else 0   (the zeros encode horizontal 'same' pad)
      bias_tiled[0, x*Cout + o] = beta[o] - mean[o]*scale[o]
    """
    cout, cin, kh, kw = w_oihw.shape
    assert kh == 3 and kw == 3
    scale = gamma / jnp.sqrt(var + eps)                       # (Cout,)
    bias = (beta - mean * scale).astype(jnp.float32)          # (Cout,)

    w = w_oihw * scale[:, None, None, None]                   # fold BN scale into weights
    wk = jnp.transpose(w, (2, 3, 1, 0))                       # (3, 3, Cin, Cout)  [kh,kw,i,o]

    u = jnp.arange(W)[:, None]                                # input column
    x = jnp.arange(W)[None, :]                                # output column
    kw_idx = u - x + 1                                        # (W, W) tap index
    valid = ((kw_idx >= 0) & (kw_idx <= 2)).astype(jnp.float32)
    band = wk[:, jnp.clip(kw_idx, 0, 2)] * valid[None, :, :, None, None]  # (3,W,W,Cin,Cout)
    T = jnp.transpose(band, (0, 1, 3, 2, 4)).reshape(3, W * cin, W * cout)
    T = T.astype(jnp.bfloat16)                                # MXU-native weights

    bias_tiled = jnp.tile(bias, W).reshape(1, W * cout)       # (1, W*Cout) f32
    return T, bias_tiled


def unet_conv_block(x_nchw, params):
    """UNETConvBlock forward: two ConvBlocks fused into one Pallas kernel (NCHW interface)."""
    (t1, b1t), (t2, b2t) = params
    N, Cin, H, W = x_nchw.shape
    x2d = jnp.transpose(x_nchw, (0, 2, 3, 1)).reshape(N, H, W * Cin)   # NCHW -> (N,H,W*Cin)
    y2d = unet_double_conv_fused(x2d, t1, b1t, t2, b2t)                # (N, H, W*Cout)
    Cout = y2d.shape[-1] // W
    y = y2d.reshape(N, H, W, Cout)
    return jnp.transpose(y, (0, 3, 1, 2))                              # NHWC -> NCHW


# ------------------------------- reference ---------------------------------- #
def reference_block(x_nchw, raw_params, eps=1e-5):
    x = jnp.transpose(x_nchw, (0, 2, 3, 1))
    for (w_oihw, gamma, beta, mean, var) in raw_params:
        w_hwio = jnp.transpose(w_oihw, (2, 3, 1, 0))
        y = jax.lax.conv_general_dilated(
            x, w_hwio, window_strides=(1, 1), padding="SAME",
            dimension_numbers=("NHWC", "HWIO", "NHWC"),
        )
        scale = gamma / jnp.sqrt(var + eps)
        x = jnp.maximum((y - mean) * scale + beta, 0.0)
    return jnp.transpose(x, (0, 3, 1, 2))


# --------------------------------- main -------------------------------------- #
if __name__ == "__main__":
    key = jax.random.PRNGKey(0)
    N, Cin, H, W = 2, 4, 16, 16
    Cout = 8

    ks = jax.random.split(key, 3)
    x = jax.random.normal(ks[0], (N, Cin, H, W), jnp.float32)

    def make_raw_params(k, cin, cout):
        kw_, kg, kb, km, kv = jax.random.split(k, 5)
        w_oihw = 0.1 * jax.random.normal(kw_, (cout, cin, 3, 3), jnp.float32)
        gamma = 1.0 + 0.1 * jax.random.normal(kg, (cout,), jnp.float32)
        beta = 0.1 * jax.random.normal(kb, (cout,), jnp.float32)
        mean = 0.1 * jax.random.normal(km, (cout,), jnp.float32)
        var = jax.random.uniform(kv, (cout,), jnp.float32, minval=0.5, maxval=1.5)
        return (w_oihw, gamma, beta, mean, var)

    raw_params = [make_raw_params(ks[1], Cin, Cout),
                  make_raw_params(ks[2], Cout, Cout)]
    params = [prepare_convblock_params(*p, W=W) for p in raw_params]

    out = jax.jit(unet_conv_block)(x, params)
    out = jax.block_until_ready(out)

    ref = reference_block(x, raw_params)
    assert out.shape == (N, Cout, H, W)
    max_err = float(jnp.max(jnp.abs(out - ref)))
    # bf16 MXU inputs/weights (f32 accumulation) -> loosen tolerance vs. the f32 reference.
    assert jnp.allclose(out, ref, atol=5e-2, rtol=5e-2), max_err

    print("KERNEL_OK")
</pallas_src>

<mosaic_0001>
module attributes {stable_mosaic.version = 11 : i64} {
  func.func @fused_double_convblock_kernel(%arg0: i32, %arg1: memref<1x16x64xf32, #tpu.memory_space<vmem>>, %arg2: memref<3x64x128xbf16, #tpu.memory_space<vmem>>, %arg3: memref<1x128xf32, #tpu.memory_space<vmem>>, %arg4: memref<3x128x128xbf16, #tpu.memory_space<vmem>>, %arg5: memref<1x128xf32, #tpu.memory_space<vmem>>, %arg6: memref<1x16x128xf32, #tpu.memory_space<vmem>>, %arg7: memref<18x64xf32, #tpu.memory_space<vmem>>, %arg8: memref<18x128xf32, #tpu.memory_space<vmem>>) attributes {dimension_semantics = [#tpu.dimension_semantics<parallel>], iteration_bounds = array<i64: 2>, scalar_prefetch = 0 : i64, scratch_operands = 2 : i64, tpu.core_type = #tpu.core_type<tc>, window_params = [{transform_indices = @transform_0, window_bounds = array<i64: 1, 16, 64>}, {pipeline_mode = #tpu.pipeline_mode<synchronous>, transform_indices = @transform_1, window_bounds = array<i64: 3, 64, 128>}, {pipeline_mode = #tpu.pipeline_mode<synchronous>, transform_indices = @transform_2, window_bounds = array<i64: 1, 128>}, {pipeline_mode = #tpu.pipeline_mode<synchronous>, transform_indices = @transform_3, window_bounds = array<i64: 3, 128, 128>}, {pipeline_mode = #tpu.pipeline_mode<synchronous>, transform_indices = @transform_4, window_bounds = array<i64: 1, 128>}, {transform_indices = @transform_5, window_bounds = array<i64: 1, 16, 128>}]} {
    %cst = arith.constant 0.000000e+00 : f32
    %0 = vector.broadcast %cst : f32 to vector<1x64xf32>
    %c0 = arith.constant 0 : index
    %c0_0 = arith.constant 0 : index
    %1 = vector.load %arg7[%c0, %c0_0] : memref<18x64xf32, #tpu.memory_space<vmem>>, vector<1x64xf32>
    tpu.vector_store %arg7[%c0, %c0_0], %0 {strides = array<i32>} : memref<18x64xf32, #tpu.memory_space<vmem>>, vector<1x64xf32>,
    %cst_1 = arith.constant 0.000000e+00 : f32
    %2 = vector.broadcast %cst_1 : f32 to vector<1x64xf32>
    %c17 = arith.constant 17 : index
    %c0_2 = arith.constant 0 : index
    %3 = vector.load %arg7[%c17, %c0_2] : memref<18x64xf32, #tpu.memory_space<vmem>>, vector<1x64xf32>
    tpu.vector_store %arg7[%c17, %c0_2], %2 {strides = array<i32>} : memref<18x64xf32, #tpu.memory_space<vmem>>, vector<1x64xf32>,
    %cst_3 = arith.constant 0.000000e+00 : f32
    %4 = vector.broadcast %cst_3 : f32 to vector<1x128xf32>
    %c0_4 = arith.constant 0 : index
    %c0_5 = arith.constant 0 : index
    %5 = vector.load %arg8[%c0_4, %c0_5] : memref<18x128xf32, #tpu.memory_space<vmem>>, vector<1x128xf32>
    tpu.vector_store %arg8[%c0_4, %c0_5], %4 {strides = array<i32>} : memref<18x128xf32, #tpu.memory_space<vmem>>, vector<1x128xf32>,
    %cst_6 = arith.constant 0.000000e+00 : f32
    %6 = vector.broadcast %cst_6 : f32 to vector<1x128xf32>
    %c17_7 = arith.constant 17 : index
    %c0_8 = arith.constant 0 : index
    %7 = vector.load %arg8[%c17_7, %c0_8] : memref<18x128xf32, #tpu.memory_space<vmem>>, vector<1x128xf32>
    tpu.vector_store %arg8[%c17_7, %c0_8], %6 {strides = array<i32>} : memref<18x128xf32, #tpu.memory_space<vmem>>, vector<1x128xf32>,
    %c0_9 = arith.constant 0 : index
    %c0_10 = arith.constant 0 : index
    %c0_11 = arith.constant 0 : index
    %8 = vector.load %arg1[%c0_9, %c0_10, %c0_11] : memref<1x16x64xf32, #tpu.memory_space<vmem>>, vector<1x16x64xf32>
    %9 = vector.shape_cast %8 : vector<1x16x64xf32> to vector<16x64xf32>
    %c1 = arith.constant 1 : index
    %c0_12 = arith.constant 0 : index
    %10 = vector.load %arg7[%c1, %c0_12] : memref<18x64xf32, #tpu.memory_space<vmem>>, vector<16x64xf32>
    tpu.vector_store %arg7[%c1, %c0_12], %9 {strides = array<i32>} : memref<18x64xf32, #tpu.memory_space<vmem>>, vector<16x64xf32>,
    %c0_13 = arith.constant 0 : index
    %c0_14 = arith.constant 0 : index
    %11 = vector.load %arg7[%c0_13, %c0_14] : memref<18x64xf32, #tpu.memory_space<vmem>>, vector<16x64xf32>
    %12 = arith.truncf %11 : vector<16x64xf32> to vector<16x64xbf16>
    %c0_15 = arith.constant 0 : index
    %c0_16 = arith.constant 0 : index
    %c0_17 = arith.constant 0 : index
    %13 = vector.load %arg2[%c0_15, %c0_16, %c0_17] : memref<3x64x128xbf16, #tpu.memory_space<vmem>>, vector<1x64x128xbf16>
    %14 = vector.shape_cast %13 : vector<1x64x128xbf16> to vector<64x128xbf16>
    %cst_18 = arith.constant dense<0.000000e+00> : vector<16x128xf32>
    %15 = tpu.matmul %12, %14, %cst_18 {dimension_numbers = #tpu.dot_dimension_numbers<[1], [0], [0], [1], [0, 0, 1, 1], [], []>} : vector<16x64xbf16>, vector<64x128xbf16>, vector<16x128xf32> -> vector<16x128xf32>
    %c1_19 = arith.constant 1 : index
    %c0_20 = arith.constant 0 : index
    %16 = vector.load %arg7[%c1_19, %c0_20] : memref<18x64xf32, #tpu.memory_space<vmem>>, vector<16x64xf32>
    %17 = arith.truncf %16 : vector<16x64xf32> to vector<16x64xbf16>
    %c1_21 = arith.constant 1 : index
    %c0_22 = arith.constant 0 : index
    %c0_23 = arith.constant 0 : index
    %18 = vector.load %arg2[%c1_21, %c0_22, %c0_23] : memref<3x64x128xbf16, #tpu.memory_space<vmem>>, vector<1x64x128xbf16>
    %19 = vector.shape_cast %18 : vector<1x64x128xbf16> to vector<64x128xbf16>
    %cst_24 = arith.constant dense<0.000000e+00> : vector<16x128xf32>
    %20 = tpu.matmul %17, %19, %cst_24 {dimension_numbers = #tpu.dot_dimension_numbers<[1], [0], [0], [1], [0, 0, 1, 1], [], []>} : vector<16x64xbf16>, vector<64x128xbf16>, vector<16x128xf32> -> vector<16x128xf32>
    %21 = arith.addf %15, %20 : vector<16x128xf32>
    %c2 = arith.constant 2 : index
    %c0_25 = arith.constant 0 : index
    %22 = vector.load %arg7[%c2, %c0_25] : memref<18x64xf32, #tpu.memory_space<vmem>>, vector<16x64xf32>
    %23 = arith.truncf %22 : vector<16x64xf32> to vector<16x64xbf16>
    %c2_26 = arith.constant 2 : index
    %c0_27 = arith.constant 0 : index
    %c0_28 = arith.constant 0 : index
    %24 = vector.load %arg2[%c2_26, %c0_27, %c0_28] : memref<3x64x128xbf16, #tpu.memory_space<vmem>>, vector<1x64x128xbf16>
    %25 = vector.shape_cast %24 : vector<1x64x128xbf16> to vector<64x128xbf16>
    %cst_29 = arith.constant dense<0.000000e+00> : vector<16x128xf32>
    %26 = tpu.matmul %23, %25, %cst_29 {dimension_numbers = #tpu.dot_dimension_numbers<[1], [0], [0], [1], [0, 0, 1, 1], [], []>} : vector<16x64xbf16>, vector<64x128xbf16>, vector<16x128xf32> -> vector<16x128xf32>
    %27 = arith.addf %21, %26 : vector<16x128xf32>
    %c0_30 = arith.constant 0 : index
    %c0_31 = arith.constant 0 : index
    %28 = vector.load %arg3[%c0_30, %c0_31] : memref<1x128xf32, #tpu.memory_space<vmem>>, vector<1x128xf32>
    %29 = vector.broadcast %28 : vector<1x128xf32> to vector<16x128xf32>
    %30 = arith.addf %27, %29 : vector<16x128xf32>
    %cst_32 = arith.constant 0.000000e+00 : f32
    %31 = vector.broadcast %cst_32 : f32 to vector<16x128xf32>
    %32 = arith.maximumf %30, %31 : vector<16x128xf32>
    %c1_33 = arith.constant 1 : index
    %c0_34 = arith.constant 0 : index
    %33 = vector.load %arg8[%c1_33, %c0_34] : memref<18x128xf32, #tpu.memory_space<vmem>>, vector<16x128xf32>
    tpu.vector_store %arg8[%c1_33, %c0_34], %32 {strides = array<i32>} : memref<18x128xf32, #tpu.memory_space<vmem>>, vector<16x128xf32>,
    %c0_35 = arith.constant 0 : index
    %c0_36 = arith.constant 0 : index
    %34 = vector.load %arg8[%c0_35, %c0_36] : memref<18x128xf32, #tpu.memory_space<vmem>>, vector<16x128xf32>
    %35 = arith.truncf %34 : vector<16x128xf32> to vector<16x128xbf16>
    %c0_37 = arith.constant 0 : index
    %c0_38 = arith.constant 0 : index
    %c0_39 = arith.constant 0 : index
    %36 = vector.load %arg4[%c0_37, %c0_38, %c0_39] : memref<3x128x128xbf16, #tpu.memory_space<vmem>>, vector<1x128x128xbf16>
    %37 = vector.shape_cast %36 : vector<1x128x128xbf16> to vector<128x128xbf16>
    %cst_40 = arith.constant dense<0.000000e+00> : vector<16x128xf32>
    %38 = tpu.matmul %35, %37, %cst_40 {dimension_numbers = #tpu.dot_dimension_numbers<[1], [0], [0], [1], [0, 0, 1, 1], [], []>} : vector<16x128xbf16>, vector<128x128xbf16>, vector<16x128xf32> -> vector<16x128xf32>
    %c1_41 = arith.constant 1 : index
    %c0_42 = arith.constant 0 : index
    %39 = vector.load %arg8[%c1_41, %c0_42] : memref<18x128xf32, #tpu.memory_space<vmem>>, vector<16x128xf32>
    %40 = arith.truncf %39 : vector<16x128xf32> to vector<16x128xbf16>
    %c1_43 = arith.constant 1 : index
    %c0_44 = arith.constant 0 : index
    %c0_45 = arith.constant 0 : index
    %41 = vector.load %arg4[%c1_43, %c0_44, %c0_45] : memref<3x128x128xbf16, #tpu.memory_space<vmem>>, vector<1x128x128xbf16>
    %42 = vector.shape_cast %41 : vector<1x128x128xbf16> to vector<128x128xbf16>
    %cst_46 = arith.constant dense<0.000000e+00> : vector<16x128xf32>
    %43 = tpu.matmul %40, %42, %cst_46 {dimension_numbers = #tpu.dot_dimension_numbers<[1], [0], [0], [1], [0, 0, 1, 1], [], []>} : vector<16x128xbf16>, vector<128x128xbf16>, vector<16x128xf32> -> vector<16x128xf32>
    %44 = arith.addf %38, %43 : vector<16x128xf32>
    %c2_47 = arith.constant 2 : index
    %c0_48 = arith.constant 0 : index
    %45 = vector.load %arg8[%c2_47, %c0_48] : memref<18x128xf32, #tpu.memory_space<vmem>>, vector<16x128xf32>
    %46 = arith.truncf %45 : vector<16x128xf32> to vector<16x128xbf16>
    %c2_49 = arith.constant 2 : index
    %c0_50 = arith.constant 0 : index
    %c0_51 = arith.constant 0 : index
    %47 = vector.load %arg4[%c2_49, %c0_50, %c0_51] : memref<3x128x128xbf16, #tpu.memory_space<vmem>>, vector<1x128x128xbf16>
    %48 = vector.shape_cast %47 : vector<1x128x128xbf16> to vector<128x128xbf16>
    %cst_52 = arith.constant dense<0.000000e+00> : vector<16x128xf32>
    %49 = tpu.matmul %46, %48, %cst_52 {dimension_numbers = #tpu.dot_dimension_numbers<[1], [0], [0], [1], [0, 0, 1, 1], [], []>} : vector<16x128xbf16>, vector<128x128xbf16>, vector<16x128xf32> -> vector<16x128xf32>
    %50 = arith.addf %44, %49 : vector<16x128xf32>
    %c0_53 = arith.constant 0 : index
    %c0_54 = arith.constant 0 : index
    %51 = vector.load %arg5[%c0_53, %c0_54] : memref<1x128xf32, #tpu.memory_space<vmem>>, vector<1x128xf32>
    %52 = vector.broadcast %51 : vector<1x128xf32> to vector<16x128xf32>
    %53 = arith.addf %50, %52 : vector<16x128xf32>
    %cst_55 = arith.constant 0.000000e+00 : f32
    %54 = vector.broadcast %cst_55 : f32 to vector<16x128xf32>
    %55 = arith.maximumf %53, %54 : vector<16x128xf32>
    %56 = vector.shape_cast %55 : vector<16x128xf32> to vector<1x16x128xf32>
    %c0_56 = arith.constant 0 : index
    %c0_57 = arith.constant 0 : index
    %c0_58 = arith.constant 0 : index
    %57 = vector.load %arg6[%c0_56, %c0_57, %c0_58] : memref<1x16x128xf32, #tpu.memory_space<vmem>>, vector<1x16x128xf32>
    tpu.vector_store %arg6[%c0_56, %c0_57, %c0_58], %56 {strides = array<i32>} : memref<1x16x128xf32, #tpu.memory_space<vmem>>, vector<1x16x128xf32>,
    return
  }
  func.func @transform_0(%arg0: i32) -> (i32, i32, i32) {
    %c0_i32 = arith.constant 0 : i32
    %c0_i32_0 = arith.constant 0 : i32
    %c0_i32_1 = arith.constant 0 : i32
    return %arg0, %c0_i32, %c0_i32_0 : i32, i32, i32
  }
  func.func @transform_1(%arg0: i32) -> (i32, i32, i32) {
    %c0_i32 = arith.constant 0 : i32
    %c0_i32_0 = arith.constant 0 : i32
    %c0_i32_1 = arith.constant 0 : i32
    %c0_i32_2 = arith.constant 0 : i32
    return %c0_i32, %c0_i32_0, %c0_i32_1 : i32, i32, i32
  }
  func.func @transform_2(%arg0: i32) -> (i32, i32) {
    %c0_i32 = arith.constant 0 : i32
    %c0_i32_0 = arith.constant 0 : i32
    %c0_i32_1 = arith.constant 0 : i32
    return %c0_i32, %c0_i32_0 : i32, i32
  }
  func.func @transform_3(%arg0: i32) -> (i32, i32, i32) {
    %c0_i32 = arith.constant 0 : i32
    %c0_i32_0 = arith.constant 0 : i32
    %c0_i32_1 = arith.constant 0 : i32
    %c0_i32_2 = arith.constant 0 : i32
    return %c0_i32, %c0_i32_0, %c0_i32_1 : i32, i32, i32
  }
  func.func @transform_4(%arg0: i32) -> (i32, i32) {
    %c0_i32 = arith.constant 0 : i32
    %c0_i32_0 = arith.constant 0 : i32
    %c0_i32_1 = arith.constant 0 : i32
    return %c0_i32, %c0_i32_0 : i32, i32
  }
  func.func @transform_5(%arg0: i32) -> (i32, i32, i32) {
    %c0_i32 = arith.constant 0 : i32
    %c0_i32_0 = arith.constant 0 : i32
    %c0_i32_1 = arith.constant 0 : i32
    return %arg0, %c0_i32, %c0_i32_0 : i32, i32, i32
  }
}

</mosaic_0001>

<bundles_post_ra>
// kernel: unet_conv_block.1
= control target key start
LH: loop header
LB: loop body
LE: loop exit
PB: predicated region body
PF: predicated region fallthrough
CT: control target
= control target key end

     0   :  { %s1212_s18 = smov 0   ;;  %s1407_s0 = inlined_call_operand.vmem [shape: f32[2,16,64], index: 0, kind: input, shape index: {}]   ;;  %s1408_s1 = inlined_call_operand.vmem [shape: bf16[3,64,128], index: 1, kind: input, shape index: {}]   ;;  %s1409_s2 = inlined_call_operand.vmem [shape: f32[1,128], index: 2, kind: input, shape index: {}]   ;;  %s1410_s3 = inlined_call_operand.vmem [shape: bf16[3,128,128], index: 3, kind: input, shape index: {}]   ;;  %s1411_s4 = inlined_call_operand.vmem [shape: f32[1,128], index: 4, kind: input, shape index: {}]   ;;  %s1412_s5 = inlined_call_operand.vmem [shape: f32[2,16,128], index: 5, kind: output, shape index: {}]  }
   0x1 LB: > { %s886_s19 = sadd.s32 4294967295, %s1178_s18   ;;  %p890_p0 = scmp.ge.s32.totalorder %s1178_s18, 1  ;;  %s1178_s18 = sphi %s1212_s18, %s15_s18  }
   0x2   : > { %p187_p1 = scmp.lt.s32.totalorder %s1178_s18, 3 }
   0x4   : > { %p188_p2 = pnand %p890_p0, %p187_p1 }
   0x5   : > { %p215_p3 = scmp.lt.s32.totalorder (!%p188_p2), %s886_s19, 1 }
   0x6   : > { %191 = sbr.rel (%p188_p2) target bundleno = 485 (0x1e5), region = 40 }
   0xb   : > { %v1136_v0 = vld [vmem:[%s1408_s1 + $0x38] sm:$0xff]   ;;  %v1180_v1 = vmov 0.0   ;;  %v1138_v3 = vld [vmem:[%s1408_s1 + $0x30] sm:$0xff]   ;;  %vm1181_vm0 = vmmov 0   ;;  %s1414_s19 = smov (!%p215_p3, %s886_s19), 1  ;;  %vm233_vm1 = vcmask 523264  }
   0xc   : > { %1030 = vmatprep.subr.bf16.mxu0 %v1180_v1  ;;  %229 = vst [vmem:[#allocation3] sm:$0x1] %v1180_v1  ;;  %230 = vst [vmem:[#allocation3 + $0x11] sm:$0x1] %v1180_v1  ;;  %1042 = vmatprep.subr.bf16.mxu1 %v1180_v1  ;;  %v1137_v2 = vld [vmem:[%s1408_s1 + $0x18] sm:$0xff]   ;;  %v1139_v4 = vld [vmem:[%s1408_s1 + $0x10] sm:$0xff]  }
   0xd   : > { %1031 = vmatpush3.bf16.msra.mxu0 %v1136_v0  ;;  %1038 = vmatprep.mubr.msk.bf16.mxu0 %vm1181_vm0, %v1180_v1  ;;  %vm226_vm2 = vcmask 516096   ;;  %v1140_v5 = vld [vmem:[%s1408_s1 + $0x28] sm:$0xff]   ;;  %s986_s30 = sshll.u32 %s1414_s19, 4  ;;  %v1142_v9 = vld [vmem:[%s1408_s1 + $0x20] sm:$0xff]   ;;  %v1144_v11 = vld [vmem:[%s1408_s1 + $0x58] sm:$0xff]  }
   0xe   : > { %1043 = vmatpush3.bf16.msra.mxu1 %v1137_v2  ;;  %1032 = vmatprep.subr.bf16.mxu0 %v1180_v1  ;;  %227 = vst.msk [vmem:[#allocation2] sm:$0x1] %vm226_vm2, %v1180_v1  ;;  %228 = vst.msk [vmem:[#allocation2 + $0x11] sm:$0x1] %vm226_vm2, %v1180_v1  ;;  %v1141_v6 = vld [vmem:[%s1408_s1 + $0x8] sm:$0xff]   ;;  %s219_s10 = scalar_lea.vmem %s1407_s0, %s986_s30  ;;  %v1143_v10 = vld [vmem:[%s1408_s1] sm:$0xff]   ;;  %s224_s11 = scalar_lea.vmem %s1412_s5, %s986_s30 }
   0xf   : > { %1044 = vmatprep.subr.bf16.mxu1 %v1180_v1  ;;  %1050 = vmatprep.mubr.msk.bf16.mxu1 %vm1181_vm0, %v1180_v1  ;;  %v231_v7 = vld [vmem:[%s219_s10] sm:$0xff]  ;;  %v232_v8 = vld [vmem:[%s219_s10 + $0x8] sm:$0xff]  ;;  %v1145_v18 = vld [vmem:[%s1408_s1 + $0x50] sm:$0xff]  }
  0x10   : > { %234 = vst.msk [vmem:[#allocation2 + $0x1] sm:$0xff] %vm233_vm1, %v231_v7  ;;  %235 = vst.msk [vmem:[#allocation2 + $0x9] sm:$0xff] %vm233_vm1, %v232_v8  ;;  %v1146_v19 = vld [vmem:[%s1408_s1 + $0x48] sm:$0xff]   ;;  %v1147_v20 = vld [vmem:[%s1408_s1 + $0x40] sm:$0xff]  }
  0x11   : > { %1033 = vmatpush3.bf16.msra.mxu0 %v1138_v3  ;;  %v1148_v24 = vld [vmem:[%s1410_s3 + $0x78] sm:$0xff]   ;;  %v1150_v25 = vld [vmem:[%s1410_s3 + $0x70] sm:$0xff]   ;;  %v1152_v26 = vld [vmem:[%s1410_s3 + $0x68] sm:$0xff]  }
  0x12   : > { %1045 = vmatpush3.bf16.msra.mxu1 %v1139_v4  ;;  %1034 = vmatprep.subr.bf16.mxu0 %v1180_v1  ;;  %v1149_v27 = vld [vmem:[%s1410_s3 + $0x38] sm:$0xff]   ;;  %v1151_v28 = vld [vmem:[%s1410_s3 + $0x30] sm:$0xff]   ;;  %v1154_v29 = vld [vmem:[%s1410_s3 + $0x60] sm:$0xff]  }
  0x13   : > { %1046 = vmatprep.subr.bf16.mxu1 %v1180_v1  ;;  %v1153_v30 = vld [vmem:[%s1410_s3 + $0x28] sm:$0xff]   ;;  %v1156_v31 = vld [vmem:[%s1410_s3 + $0x58] sm:$0xff]   ;;  %v1158_v32 = vld [vmem:[%s1410_s3 + $0x50] sm:$0xff]  }
  0x14   : > { %v1155_v33 = vld [vmem:[%s1410_s3 + $0x20] sm:$0xff]   ;;  %v1160_v34 = vld [vmem:[%s1410_s3 + $0x48] sm:$0xff]   ;;  %v1157_v35 = vld [vmem:[%s1410_s3 + $0x18] sm:$0xff]  }
  0x15   : > { %1035 = vmatpush3.bf16.msra.mxu0 %v1140_v5  ;;  %v1162_v36 = vld [vmem:[%s1410_s3 + $0x40] sm:$0xff]   ;;  %v1159_v37 = vld [vmem:[%s1410_s3 + $0x10] sm:$0xff]   ;;  %v1161_v38 = vld [vmem:[%s1410_s3 + $0x8] sm:$0xff]  }
  0x16   : > { %1047 = vmatpush3.bf16.msra.mxu1 %v1141_v6  ;;  %1036 = vmatprep.subr.bf16.mxu0 %v1180_v1  ;;  %v1163_v39 = vld [vmem:[%s1410_s3] sm:$0xff]   ;;  %v1164_v61 = vld [vmem:[%s1410_s3 + $0xb8] sm:$0xff]   ;;  %v1165_v63 = vld [vmem:[%s1410_s3 + $0xb0] sm:$0xff]  }
  0x17   : > { %1048 = vmatprep.subr.bf16.mxu1 %v1180_v1  ;;  %v247_v12 = vld [vmem:[#allocation2 + $0x1] sm:$0xff]  ;;  %v248_v13 = vld [vmem:[#allocation2 + $0x9] sm:$0xff]  ;;  %v926_v50 = vld [vmem:[%s1409_s2] ss:$0 sm:$0xff] }
  0x18   : > { %v236_v14 = vld [vmem:[#allocation2] sm:$0xff]  ;;  %v249_v15 = vpack.c.bf16 %v248_v13, %v247_v12  ;;  %v237_v16 = vld [vmem:[#allocation2 + $0x8] sm:$0xff]  ;;  %v1168_v6 = vld [vmem:[%s1410_s3 + $0x98] sm:$0xff]  }
  0x19   : > { %1037 = vmatpush3.bf16.msra.mxu0 %v1142_v9  ;;  %v238_v17 = vpack.c.bf16 %v237_v16, %v236_v14  ;;  %v395_v21 = vld [vmem:[#allocation2 + $0x2] sm:$0xff]  ;;  %v396_v22 = vld [vmem:[#allocation2 + $0xa] sm:$0xff] }
  0x1a   : > { %1049 = vmatpush3.bf16.msra.mxu1 %v1143_v10  ;;  %1054 = vmatprep.subr.bf16.mxu0 %v1180_v1  ;;  %v397_v23 = vpack.c.bf16 %v396_v22, %v395_v21  ;;  %v1166_v3 = vld [vmem:[%s1410_s3 + $0xa8] sm:$0xff]   ;;  %v1167_v5 = vld [vmem:[%s1410_s3 + $0xa0] sm:$0xff]   ;;  %v1169_v7 = vld [vmem:[%s1410_s3 + $0x90] sm:$0xff]  }
  0x1b   : > { %1066 = vmatprep.subr.bf16.mxu1 %v1180_v1  ;;  %v1170_v8 = vld [vmem:[%s1410_s3 + $0x88] sm:$0xff]   ;;  %v1171_v9 = vld [vmem:[%s1410_s3 + $0x80] sm:$0xff]  }
  0x1c   : > { %1039 = vmatmul.mubr.msk.bf16.vlgmr.msra.gmra.mxu0 %vm233_vm1, %v249_v15 }
  0x1d   : > { %1051 = vmatmul.mubr.msk.bf16.vlgmr.msra.gmra.mxu1 %vm233_vm1, %v238_v17  ;;  %1055 = vmatpush3.bf16.msra.mxu0 %v1144_v11 }
  0x1e   : > { %1056 = vmatprep.subr.bf16.mxu0 %v1180_v1  ;;  %1062 = vmatprep.mubr.msk.bf16.mxu0 %vm1181_vm0, %v1180_v1 }
  0x1f   : > { %1082 = vmatprep.mubr.msk.bf16.mxu1 %vm1181_vm0, %v1180_v1  ;;  %1067 = vmatpush3.bf16.msra.mxu1 %v1148_v24 }
  0x20   : > { %1068 = vmatprep.subr.bf16.mxu1 %v1180_v1 }
  0x21   : > { %1057 = vmatpush3.bf16.msra.mxu0 %v1145_v18 }
  0x22   : > { %1058 = vmatprep.subr.bf16.mxu0 %v1180_v1 }
  0x23   : > { %1069 = vmatpush3.bf16.msra.mxu1 %v1150_v25 }
  0x24   : > { %1070 = vmatprep.subr.bf16.mxu1 %v1180_v1 }
  0x25   : > { %1059 = vmatpush3.bf16.msra.mxu0 %v1146_v19 }
  0x26   : > { %1060 = vmatprep.subr.bf16.mxu0 %v1180_v1 }
  0x27   : > { %1071 = vmatpush3.bf16.msra.mxu1 %v1152_v26 }
  0x28   : > { %1072 = vmatprep.subr.bf16.mxu1 %v1180_v1 }
  0x29   : > { %1061 = vmatpush3.bf16.msra.mxu0 %v1147_v20 }
  0x2a   : > { %1086 = vmatprep.subr.bf16.mxu0 %v1180_v1 }
  0x2b   : > { %1073 = vmatpush3.bf16.msra.mxu1 %v1154_v29 }
  0x2c   : > { %1063 = vmatmul.mubr.msk.bf16.vlgmr.msra.gmra.mxu0 %vm233_vm1, %v397_v23  ;;  %1074 = vmatprep.subr.bf16.mxu1 %v1180_v1 }
  0x2d   : > { %1102 = vmatprep.mubr.msk.bf16.mxu0 %vm1181_vm0, %v1180_v1  ;;  %1087 = vmatpush3.bf16.msra.mxu0 %v1149_v27 }
  0x2e   : > { %1088 = vmatprep.subr.bf16.mxu0 %v1180_v1 }
  0x2f   : > { %1075 = vmatpush3.bf16.msra.mxu1 %v1156_v31 }
  0x30   : > { %1076 = vmatprep.subr.bf16.mxu1 %v1180_v1 }
  0x31   : > { %1089 = vmatpush3.bf16.msra.mxu0 %v1151_v28 }
  0x32   : > { %1090 = vmatprep.subr.bf16.mxu0 %v1180_v1 }
  0x33   : > { %1077 = vmatpush3.bf16.msra.mxu1 %v1158_v32 }
  0x34   : > { %1078 = vmatprep.subr.bf16.mxu1 %v1180_v1 }
  0x35   : > { %1091 = vmatpush3.bf16.msra.mxu0 %v1153_v30 }
  0x36   : > { %1092 = vmatprep.subr.bf16.mxu0 %v1180_v1 }
  0x37   : > { %1079 = vmatpush3.bf16.msra.mxu1 %v1160_v34 }
  0x38   : > { %1080 = vmatprep.subr.bf16.mxu1 %v1180_v1 }
  0x39   : > { %1093 = vmatpush3.bf16.msra.mxu0 %v1155_v33 }
  0x3a   : > { %1094 = vmatprep.subr.bf16.mxu0 %v1180_v1 }
  0x3b   : > { %1081 = vmatpush3.bf16.msra.mxu1 %v1162_v36 }
  0x3c   : > { %1106 = vmatprep.subr.bf16.mxu1 %v1180_v1 }
  0x3d   : > { %1095 = vmatpush3.bf16.msra.mxu0 %v1157_v35 }
  0x3e   : > { %1096 = vmatprep.subr.bf16.mxu0 %v1180_v1 }
  0x41   : > { %1097 = vmatpush3.bf16.msra.mxu0 %v1159_v37 }
  0x42   : > { %1098 = vmatprep.subr.bf16.mxu0 %v1180_v1 }
  0x45   : > { %1099 = vmatpush3.bf16.msra.mxu0 %v1161_v38 }
  0x46   : > { %1100 = vmatprep.subr.bf16.mxu0 %v1180_v1 }
  0x49   : > { %1101 = vmatpush3.bf16.msra.mxu0 %v1163_v39 }
  0xdc   : > { %v320_v40 = vpop.f32.mrf.mxu0 }
  0xdd   : > { %v388_v41 = vpop.f32.mrf.mxu1 }
  0xde   : > { %v1040_v42 = vpop.f32.mrf.mxu0  ;;  %v389_v48 = vadd.f32 %v388_v41, %v320_v40 }
  0xdf   : > { %v1052_v43 = vpop.f32.mrf.mxu1 }
  0xe0   : > { %v323_v44 = vpop.f32.mrf.mxu0 }
  0xe1   : > { %v391_v45 = vpop.f32.mrf.mxu1 }
  0xe2   : > { %v1041_v46 = vpop.f32.mrf.mxu0  ;;  %v392_v53 = vadd.f32 %v391_v45, %v323_v44 }
  0xe3   : > { %v1053_v47 = vpop.f32.mrf.mxu1 }
  0xec   : > { %v468_v49 = vpop.f32.mrf.mxu0 }
  0xed   : > { %v475_v51 = vadd.f32 %v468_v49, %v389_v48 }
  0xee   : > { %v1064_v52 = vpop.f32.mrf.mxu0 }
  0xef   : > { %v484_v54 = vadd.f32 %v926_v50, %v475_v51 }
  0xf0   : > { %v471_v55 = vpop.f32.mrf.mxu0 }
  0xf1   : > { %v486_v56 = vmax.f32 %v484_v54, 0.0  ;;  %v476_v57 = vadd.f32 %v471_v55, %v392_v53 }
  0xf2   : > { %v1065_v58 = vpop.f32.mrf.mxu0 }
  0xf3   : > { %488 = vst [vmem:[#allocation3 + $0x1] sm:$0xff] %v486_v56  ;;  %v485_v59 = vadd.f32 %v926_v50, %v476_v57 }
  0xf5   : > { %v487_v60 = vmax.f32 %v485_v59, 0.0 }
  0xf7   : > { %489 = vst [vmem:[#allocation3 + $0x9] sm:$0xff] %v487_v60  ;;  %v511_v62 = vpack.c.bf16 %v487_v60, %v486_v56 }
  0xf9   : > { %1083 = vmatmul.mubr.bf16.vlgmr.msra.gmra.mxu1 %v511_v62 }
  0xfa   : > { %1107 = vmatpush3.bf16.msra.mxu1 %v1164_v61  ;;  %1122 = vmatprep.mubr.msk.bf16.mxu1 %vm1181_vm0, %v1180_v1  ;;  %v490_v0 = vld [vmem:[#allocation3] sm:$0xff] }
  0xfb   : > { %1108 = vmatprep.subr.bf16.mxu1 %v1180_v1 }
  0xfe   : > { %v491_v2 = vld [vmem:[#allocation3 + $0x8] sm:$0xff]  ;;  %1109 = vmatpush3.bf16.msra.mxu1 %v1165_v63 }
  0xff   : > { %v492_v4 = vpack.c.bf16 %v491_v2, %v490_v0  ;;  %1110 = vmatprep.subr.bf16.mxu1 %v1180_v1  ;;  %v707_v10 = vld [vmem:[#allocation3 + $0x2] sm:$0xff]  ;;  %v708_v11 = vld [vmem:[#allocation3 + $0xa] sm:$0xff] }
 0x100   : > { %v709_v12 = vpack.c.bf16 %v708_v11, %v707_v10 }
 0x101   : > { %1103 = vmatmul.mubr.bf16.vlgmr.msra.gmra.mxu0 %v492_v4 }
 0x102   : > { %1111 = vmatpush3.bf16.msra.mxu1 %v1166_v3 }
 0x103   : > { %1112 = vmatprep.subr.bf16.mxu1 %v1180_v1 }
 0x106   : > { %1113 = vmatpush3.bf16.msra.mxu1 %v1167_v5 }
 0x107   : > { %1114 = vmatprep.subr.bf16.mxu1 %v1180_v1 }
 0x10a   : > { %1115 = vmatpush3.bf16.msra.mxu1 %v1168_v6 }
 0x10b   : > { %1116 = vmatprep.subr.bf16.mxu1 %v1180_v1 }
 0x10e   : > { %1117 = vmatpush3.bf16.msra.mxu1 %v1169_v7 }
 0x10f   : > { %1118 = vmatprep.subr.bf16.mxu1 %v1180_v1 }
 0x112   : > { %1119 = vmatpush3.bf16.msra.mxu1 %v1170_v8 }
 0x113   : > { %1120 = vmatprep.subr.bf16.mxu1 %v1180_v1  ;;  %v983_v1 = vld [vmem:[%s1411_s4] ss:$0 sm:$0xff] }
 0x116   : > { %1121 = vmatpush3.bf16.msra.mxu1 %v1171_v9 }
 0x119   : > { %1123 = vmatmul.mubr.bf16.vlgmr.msra.gmra.mxu1 %v709_v12 }
 0x1b9   : > { %v611_v13 = vpop.f32.mrf.mxu1 }
 0x1bb   : > { %v1084_v14 = vpop.f32.mrf.mxu1 }
 0x1bd   : > { %v614_v15 = vpop.f32.mrf.mxu1 }
 0x1bf   : > { %v1085_v16 = vpop.f32.mrf.mxu1 }
 0x1c1   : > { %v700_v17 = vpop.f32.mrf.mxu0 }
 0x1c2   : > { %v701_v21 = vadd.f32 %v700_v17, %v611_v13 }
 0x1c3   : > { %v1104_v18 = vpop.f32.mrf.mxu0 }
 0x1c5   : > { %v703_v19 = vpop.f32.mrf.mxu0 }
 0x1c6   : > { %v704_v25 = vadd.f32 %v703_v19, %v614_v15 }
 0x1c7   : > { %v1105_v20 = vpop.f32.mrf.mxu0 }
 0x1d9   : > { %v809_v22 = vpop.f32.mrf.mxu1 }
 0x1da   : > { %v816_v23 = vadd.f32 %v809_v22, %v701_v21 }
 0x1db   : > { %v1124_v24 = vpop.f32.mrf.mxu1 }
 0x1dc   : > { %v825_v26 = vadd.f32 %v983_v1, %v816_v23 }
 0x1dd   : > { %v812_v27 = vpop.f32.mrf.mxu1 }
 0x1de   : > { %v827_v28 = vmax.f32 %v825_v26, 0.0  ;;  %v817_v29 = vadd.f32 %v812_v27, %v704_v25 }
 0x1df   : > { %v1125_v30 = vpop.f32.mrf.mxu1 }
 0x1e0   : > { %829 = vst [vmem:[%s224_s11] sm:$0xff] %v827_v28  ;;  %v826_v31 = vadd.f32 %v983_v1, %v817_v29 }
 0x1e2   : > { %v828_v32 = vmax.f32 %v826_v31, 0.0 }
 0x1e4   : > { %830 = vst [vmem:[%s224_s11 + $0x8] sm:$0xff] %v828_v32 }
 0x1e5 PF: > { %s15_s18 = sadd.s32 1, %s1178_s18  }
 0x1e6   : > { %p12_p4 = scmp.ge.s32.totalorder %s15_s18, 4  }
 0x1e8   :  { %14 = sbr.rel (!%p12_p4) target bundleno = 1 (0x1), region = 74 }

</bundles_post_ra>
